<compile_context>
chip_gen: v6e
topology: v6e:2x2x1
jax: 0.10.0
libtpu: 0.0.40
codegen_flags: <defaults>
</compile_context>

<pallas_src>
import jax
import jax.numpy as jnp
from jax.experimental import pallas as pl
from jax.experimental.pallas import tpu as pltpu


def skipgram_kernel(emb_ref, w_ref, out_ref):
    # emb_ref : VMEM (B, D)       gathered embedding rows (resident across grid)
    # w_ref   : VMEM (D, TILE_V)  current vocab tile of the transposed fc weight
    # out_ref : VMEM (B, TILE_V)  log_softmax(dim=0) output tile
    logits = jnp.dot(
        emb_ref[...].astype(w_ref.dtype),
        w_ref[...],
        preferred_element_type=jnp.float32,
    )  # [B, TILE_V] f32 accumulate on the MXU

    # log_softmax over dim=0 (batch axis) — per vocab column, tile-local.
    m = jnp.max(logits, axis=0, keepdims=True)          # [1, TILE_V]
    shifted = logits - m
    lse = jnp.log(jnp.sum(jnp.exp(shifted), axis=0, keepdims=True))
    out_ref[...] = (shifted - lse).astype(out_ref.dtype)


def _round_up(x, m):
    return ((x + m - 1) // m) * m


def _pick_tile_v(V, D, B, w_bytes, out_bytes, desired, vmem_budget):
    """Largest 128-multiple vocab tile that (a) fits the double-buffered VMEM
    budget, (b) leaves >= 2 grid steps (v7x megacore), (c) <= padded V."""
    per_col = 2 * (D * w_bytes + B * out_bytes)          # 2x: double-buffered in+out
    max_cols = max(128, vmem_budget // max(per_col, 1))
    tile = min(desired, max_cols)
    if V >= 256:
        tile = min(tile, max(128, V // 2))               # keep both v7x TCs fed
    tile = max(128, (tile // 128) * 128)                 # lane-dense multiple of 128
    tile = min(tile, _round_up(V, 128))
    return int(tile)


def skipgram_forward(indices, emb_table, w_t, bias=None, *,
                     tile_v=2048, out_dtype=jnp.float32,
                     vmem_budget_bytes=12 * 1024 * 1024):
    """Forward pass of SkipGram.

    indices   : [B] int token ids
    emb_table : [V, D] embedding table (stays in HBM; only B rows are read)
    w_t       : [D, V] fc weight stored transposed (f32 or pre-cast bf16 —
                the kernel streams it in whatever dtype it arrives in)
    bias      : [V] fc bias — accepted for API parity; mathematically a no-op
                under log_softmax(dim=0), so it is not sent to the kernel.
    """
    del bias  # additive per-column constant cancels under log_softmax(dim=0)
    B = indices.shape[0]
    V, D = emb_table.shape
    assert w_t.shape == (D, V)

    # Cheap B-row gather in the wrapper; avoids parking the table in VMEM.
    emb = jnp.take(emb_table, indices.astype(jnp.int32), axis=0)        # [B, D]

    w_bytes = jnp.dtype(w_t.dtype).itemsize
    out_bytes = jnp.dtype(out_dtype).itemsize
    tile = _pick_tile_v(V, D, B, w_bytes, out_bytes, tile_v, vmem_budget_bytes)
    grid = (pl.cdiv(V, tile),)   # partial last tile handled by masked boundary block

    grid_spec = pltpu.PrefetchScalarGridSpec(
        num_scalar_prefetch=0,
        grid=grid,
        in_specs=[
            # [B, D] activations: same block every step -> resident in VMEM.
            pl.BlockSpec((B, D), lambda j: (0, 0)),
            # [D, TILE_V] weight tile: streamed + double-buffered along V.
            pl.BlockSpec((D, tile), lambda j: (0, j)),
        ],
        out_specs=pl.BlockSpec((B, tile), lambda j: (0, j)),
    )

    return pl.pallas_call(
        skipgram_kernel,
        out_shape=jax.ShapeDtypeStruct((B, V), out_dtype),
        grid_spec=grid_spec,
        compiler_params=pltpu.CompilerParams(
            # Vocab tiles are independent -> shard across TensorCores on v7x.
            dimension_semantics=("parallel",),
        ),
    )(emb, w_t)


def skipgram_reference(indices, emb_table, w_t, bias):
    # Faithful f32 reference of the PyTorch module (bias included).
    emb = jnp.take(emb_table, indices, axis=0)
    logits = emb @ w_t + bias[None, :]
    return jax.nn.log_softmax(logits, axis=0)


def _make_params(key, V, D, B):
    k_emb, k_w, k_b, k_idx = jax.random.split(key, 4)
    # nn.Embedding default init: N(0, 1)
    emb_table = jax.random.normal(k_emb, (V, D), jnp.float32)
    # nn.Linear default init: U(-1/sqrt(in), 1/sqrt(in)); weight stored [D, V]
    bound = 1.0 / (D ** 0.5)
    w_t = jax.random.uniform(k_w, (D, V), jnp.float32, minval=-bound, maxval=bound)
    bias = jax.random.uniform(k_b, (V,), jnp.float32, minval=-bound, maxval=bound)
    indices = jax.random.randint(k_idx, (B,), 0, V, jnp.int32)
    return emb_table, w_t, bias, indices


if __name__ == "__main__":
    key = jax.random.PRNGKey(0)
    k1, k2 = jax.random.split(key)

    # --- Case 1: divisible vocab, f32 weight streaming --------------------
    V, D, B = 1024, 128, 8
    emb_table, w_t, bias, indices = _make_params(k1, V, D, B)

    ref = jax.block_until_ready(skipgram_reference(indices, emb_table, w_t, bias))
    out = jax.block_until_ready(skipgram_forward(indices, emb_table, w_t, bias))
    assert out.shape == (B, V)
    assert jnp.max(jnp.abs(out - ref)) < 1e-4, "f32 kernel mismatch vs reference"

    # --- Case 2: pre-cast bf16 weights (halved dominant HBM stream) -------
    w_t_bf16 = jax.block_until_ready(w_t.astype(jnp.bfloat16))   # hoisted, one-time cast
    out_bf16 = jax.block_until_ready(
        skipgram_forward(indices, emb_table, w_t_bf16, bias))
    assert jnp.max(jnp.abs(out_bf16 - ref)) < 5e-2, "bf16 kernel mismatch vs reference"

    # --- Case 3: non-divisible vocab (masked last tile, no (D,V) fallback) -
    V2 = 1000
    emb_table2, w_t2, bias2, indices2 = _make_params(k2, V2, D, B)
    ref2 = jax.block_until_ready(
        skipgram_reference(indices2, emb_table2, w_t2, bias2))
    out2 = jax.block_until_ready(
        skipgram_forward(indices2, emb_table2, w_t2, bias2))
    assert out2.shape == (B, V2)
    assert jnp.max(jnp.abs(out2 - ref2)) < 1e-4, "ragged-V kernel mismatch vs reference"

    print("KERNEL_OK")
</pallas_src>

<mosaic_0001>
module attributes {stable_mosaic.version = 11 : i64} {
  func.func @skipgram_kernel(%arg0: i32, %arg1: memref<8x128xf32, #tpu.memory_space<vmem>>, %arg2: memref<128x512xf32, #tpu.memory_space<vmem>>, %arg3: memref<8x512xf32, #tpu.memory_space<vmem>>) attributes {dimension_semantics = [#tpu.dimension_semantics<parallel>], iteration_bounds = array<i64: 2>, scalar_prefetch = 0 : i64, scratch_operands = 0 : i64, tpu.core_type = #tpu.core_type<tc>, window_params = [{pipeline_mode = #tpu.pipeline_mode<synchronous>, transform_indices = @transform_0, window_bounds = array<i64: 8, 128>}, {transform_indices = @transform_1, window_bounds = array<i64: 128, 512>}, {transform_indices = @transform_2, window_bounds = array<i64: 8, 512>}]} {
    %c0 = arith.constant 0 : index
    %c0_0 = arith.constant 0 : index
    %0 = vector.load %arg1[%c0, %c0_0] : memref<8x128xf32, #tpu.memory_space<vmem>>, vector<8x128xf32>
    %c0_1 = arith.constant 0 : index
    %c0_2 = arith.constant 0 : index
    %1 = vector.load %arg2[%c0_1, %c0_2] : memref<128x512xf32, #tpu.memory_space<vmem>>, vector<128x512xf32>
    %cst = arith.constant dense<0.000000e+00> : vector<8x512xf32>
    %2 = tpu.matmul %0, %1, %cst {dimension_numbers = #tpu.dot_dimension_numbers<[1], [0], [0], [1], [0, 0, 1, 1], [], []>} : vector<8x128xf32>, vector<128x512xf32>, vector<8x512xf32> -> vector<8x512xf32>
    %cst_3 = arith.constant dense<0xFF800000> : vector<512xf32>
    %3 = vector.multi_reduction <maximumf>, %2, %cst_3 [0] : vector<8x512xf32> to vector<512xf32>
    %4 = vector.shape_cast %3 : vector<512xf32> to vector<1x512xf32>
    %5 = vector.broadcast %4 : vector<1x512xf32> to vector<8x512xf32>
    %6 = arith.subf %2, %5 : vector<8x512xf32>
    %7 = math.exp %6 : vector<8x512xf32>
    %cst_4 = arith.constant dense<0.000000e+00> : vector<512xf32>
    %8 = vector.multi_reduction <add>, %7, %cst_4 [0] : vector<8x512xf32> to vector<512xf32>
    %9 = vector.shape_cast %8 : vector<512xf32> to vector<1x512xf32>
    %10 = math.log %9 : vector<1x512xf32>
    %11 = vector.broadcast %10 : vector<1x512xf32> to vector<8x512xf32>
    %12 = arith.subf %6, %11 : vector<8x512xf32>
    %c0_5 = arith.constant 0 : index
    %c0_6 = arith.constant 0 : index
    %13 = vector.load %arg3[%c0_5, %c0_6] : memref<8x512xf32, #tpu.memory_space<vmem>>, vector<8x512xf32>
    tpu.vector_store %arg3[%c0_5, %c0_6], %12 {strides = array<i32>} : memref<8x512xf32, #tpu.memory_space<vmem>>, vector<8x512xf32>,
    return
  }
  func.func @transform_0(%arg0: i32) -> (i32, i32) {
    %c0_i32 = arith.constant 0 : i32
    %c0_i32_0 = arith.constant 0 : i32
    %c0_i32_1 = arith.constant 0 : i32
    return %c0_i32, %c0_i32_0 : i32, i32
  }
  func.func @transform_1(%arg0: i32) -> (i32, i32) {
    %c0_i32 = arith.constant 0 : i32
    %c0_i32_0 = arith.constant 0 : i32
    return %c0_i32, %arg0 : i32, i32
  }
  func.func @transform_2(%arg0: i32) -> (i32, i32) {
    %c0_i32 = arith.constant 0 : i32
    %c0_i32_0 = arith.constant 0 : i32
    return %c0_i32, %arg0 : i32, i32
  }
}

</mosaic_0001>

<bundles_post_ra>
// kernel: tpu_custom_call.1
= control target key start
LH: loop header
LB: loop body
LE: loop exit
PB: predicated region body
PF: predicated region fallthrough
CT: control target
= control target key end

     0   :  { %7 = vsyncpa [#allocation3], 0  ;;  %s1038_s0 = inlined_call_operand.hbm [shape: f32[8,128], index: 0, kind: input, shape index: {}]   ;;  %s1039_s1 = inlined_call_operand.hbm [shape: f32[128,1024], index: 1, kind: input, shape index: {}]   ;;  %s1040_s2 = inlined_call_operand.hbm [shape: f32[8,1024], index: 2, kind: output, shape index: {}]  }
   0x1   :  { %8 = vsyncpa [#allocation6], 0 }
   0x2   :  { %10 = vsyncpa [#allocation6 + $0x1], 0 }
   0x3   :  { %11 = vsyncpa [#allocation4], 0 }
   0x4   :  { %13 = vsyncpa [#allocation4 + $0x1], 0  ;;  %s798_s9 = smov 0   ;;  %s800_s10 = smov 0  }
   0x5   :  { %s802_s11 = smov 0   ;;  %s804_s12 = smov 0  }
   0x6 LB: > { %s819_s13 = sadd.s32 4294967295, %s774_s12   ;;  %s557_s14 = sadd.s32 4294967294, %s774_s12   ;;  %s774_s12 = sphi %s804_s12, %s1063_s12   ;;  %s770_s11 = sphi %s802_s11, %s1062_s11   ;;  %s766_s10 = sphi %s800_s10, %s1061_s10   ;;  %s762_s9 = sphi %s798_s9, %s1060_s9  }
   0x7   : > { %s823_s15 = sadd.s32 1, %s774_s12   ;;  %s47_s16 = sadd.s32 1, %s770_s11 }
   0x8   : > { %s44_s17 = ssub.s32 %s774_s12, %s823_s15  ;;  %p54_p0 = scmp.ne.s32.totalorder %s770_s11, %s766_s10 }
   0x9   : > { %p45_p1 = scmp.eq.s32.totalorder %s44_s17, 0  ;;  %p55_p2 = scmp.eq.s32.totalorder %s774_s12, 0 }
   0xa   : > { %p60_p3 = scmp.ne.s32.totalorder %s766_s10, %s762_s9  ;;  %p1041_p4 = scmp.eq.s32.totalorder %s819_s13, 0 }
   0xb   : > { %s835_s18 = scalar_select %p45_p1, %s770_s11, %s47_s16  }
   0xc   : > { %p837_p5 = por %p55_p2, %p54_p0  ;;  %p843_p6 = por %p1041_p4, %p60_p3 }
   0xd   : > { %p84_p7 = scmp.eq.s32.totalorder %s819_s13, 1  ;;  %p90_p8 = scmp.eq.s32.totalorder %s557_s14, 1 }
   0xe   : > { %s1046_s20 = scalar_select %p843_p6, 1, 0 }
   0xf   : > { %p558_p9 = scmp.ge.s32.totalorder %s774_s12, 1  ;;  %p97_p10 = scmp.lt.s32.totalorder %s774_s12, 3 }
  0x10   : > { %p850_p11 = por %p84_p7, %p54_p0  ;;  %p854_p12 = por %p90_p8, %p60_p3 }
  0x11   : > { %p858_p13 = pnand %p558_p9, %p97_p10  ;;  %s776_s24 = smov [#allocation2]  }
  0x12   : > { %s1047_s21 = scalar_select %p850_p11, 1, 0 }
  0x13   : > { %s1048_s22 = scalar_select %p854_p12, 1, 0 }
  0x14   : > { %s1049_s23 = scalar_select %p858_p13, 1, 0 }
  0x15   : > { %p583_p2 = pneg %p858_p13  ;;  %s110_s25 = sshll.u32 %s776_s24, 4  ;;  %s111_s25 = int_to_ptr.vmem [resolvable:$true] %s110_s25 }
  0x16   : > { %p596_p4 = scmp.lt.s32.totalorder %s774_s12, 2  ;;  %p1050_p0 = scmp.eq.s32.totalorder %s819_s13, 0 }
  0x17   : > { %s121_s27 = sand.u32 1, %s770_s11   ;;  %s663_s30 = scalar_lea.vmem %s111_s25, 128 }
  0x18   : > { %p868_p7 = pnand %p583_p2, %p1050_p0  ;;  %p875_p3 = pnand %p596_p4, %p837_p5 }
  0x19   : > { %s561_s29 = sshll.u32 %s121_s27, 9  ;;  %p664_p9 = scmp.ne.s32.totalorder %s111_s25, %s663_s30 }
  0x1a   : > { %p654_p8 = pneg %p868_p7  ;;  %p671_p12 = scmp.lt.s32.totalorder %s111_s25, %s111_s25 }
  0x1b   : > { %p672_p11 = scmp.lt.s32.totalorder %s663_s30, %s663_s30 }
  0x1c   : > { %p666_p10 = pnand %p664_p9, %p654_p8 }
  0x1d   : > { %p673_p2 = por %p672_p11, %p671_p12 }
  0x1e   : > { %p667_p1 = pneg %p666_p10 }
  0x20   : > { %p674_p0 = pnand %p673_p2, %p667_p1 }
  0x22   : > { %677 = shalt.err (!%p674_p0)
}
  0x23   : > { %586 = dma.hbm_to_vmem [thread:$0]  (!%p868_p7), %s1038_s0, 128, %s111_s25, [#allocation3]  }
  0x24   : > { %s573_s5 = sshll.u32 %s774_s12, 9  ;;  %s125_s6 = scalar_lea.vmem [#allocation5], %s561_s29 }
  0x25   : > { %s132_s7 = sshll.u32 %s125_s6, 4  ;;  %s890_s16 = scalar_lea.hbm %s1039_s1, %s573_s5  ;;  %s892_s7 = int_to_ptr.vmem [resolvable:$true] %s132_s7 }
  0x26   : > { %s894_s17 = scalar_lea.sflag [#allocation6], %s121_s27  ;;  %s678_s19 = scalar_lea.hbm %s890_s16, 8192 }
  0x27   : > { %p679_p4 = scmp.ne.s32.totalorder %s890_s16, %s678_s19  ;;  %p680_p5 = pneg %p875_p3 }
  0x28   : > { %s683_s26 = scalar_lea.hbm %s1039_s1, 16384  ;;  %p684_p1 = scmp.lt.s32.totalorder %s890_s16, %s1039_s1 }
  0x29   : > { %p681_p11 = pnand %p680_p5, %p679_p4  ;;  %p685_p7 = scmp.lt.s32.totalorder %s683_s26, %s678_s19 }
  0x2b   : > { %p682_p12 = pneg %p681_p11  ;;  %p686_p8 = por %p685_p7, %p684_p1 }
  0x2d   : > { %p687_p9 = pnand %p686_p8, %p682_p12 }
  0x2f   : > { %690 = shalt.err (!%p687_p9)
}
  0x30   : > { %s691_s27 = scalar_lea.vmem %s892_s7, 8192  ;;  %s777_s3 = smov [#allocation5]  }
  0x31   : > { %p692_p10 = scmp.ne.s32.totalorder %s892_s7, %s691_s27  ;;  %s696_s4 = sshll.u32 %s777_s3, 4  ;;  %s697_s4 = int_to_ptr.vmem [resolvable:$false] %s696_s4 }
  0x32   : > { %s698_s5 = scalar_lea.vmem %s697_s4, 16384  ;;  %p699_p4 = scmp.lt.s32.totalorder %s892_s7, %s697_s4 }
  0x33   : > { %p694_p2 = pnand %p692_p10, %p680_p5  ;;  %p700_p11 = scmp.lt.s32.totalorder %s698_s5, %s691_s27 }
  0x35   : > { %p695_p0 = pneg %p694_p2  ;;  %p701_p6 = por %p700_p11, %p699_p4 }
  0x37   : > { %p702_p13 = pnand %p701_p6, %p695_p0 }
  0x39   : > { %705 = shalt.err (!%p702_p13)
}
  0x3a   : > { %s778_s6 = smov 1024   ;;  %s779_s8 = smov 512  }
  0x3b   : > { %s780_s14 = smov 32   ;;  %p1053_p5 = scmp.ne.s32.totalorder %s1049_s23, 0 }
  0x3c   : > { %590 = dma.hbm_to_vmem [thread:$0]  (!%p875_p3), %s890_s16, 8192, %s892_s7, %s894_s17, %s778_s6, %s779_s8, %s780_s14  }
  0x3d   : > { %144 = sbr.rel (%p1053_p5) target bundleno = 374 (0x176), region = 28  ;;  %p1054_p12 = scmp.eq.s32.totalorder (!%p1053_p5), %s819_s13, 0 }
  0x42   : > { %749 = dma.done.wait (%p1054_p12), [#allocation3], 128   ;;  %p1055_p1 = pmov %p1054_p12 }
  0x43   : > { %s922_s19 = sand.u32 1, %s766_s10   ;;  %p1056_p6 = scmp.ne.s32.totalorder %s1046_s20, 0 }
  0x44   : > { %751 = vsyncadd (%p1055_p1), [#allocation3], 4294967168  ;;  %s566_s24 = sshll.u32 %s922_s19, 9  ;;  %s151_s25 = scalar_lea.sflag [#allocation6], %s922_s19 }
  0x45   : > { %s926_s26 = scalar_lea.vmem [#allocation5], %s566_s24 }
  0x46   : > { %753 = dma.done.wait (%p1056_p6), %s151_s25, 8192  }
  0x47   : > { %755 = vsyncadd (%p1056_p6), %s151_s25, 4294959104  ;;  %v781_v0 = vmov 0.0   ;;  %v239_v1 = vld [vmem:[%s926_s26 + $0x1e8] sm:$0xff]  ;;  %v241_v2 = vld [vmem:[%s926_s26 + $0x1f8] sm:$0xff]  ;;  %s567_s20 = sshll.u32 %s922_s19, 5  ;;  %s574_s23 = sshll.u32 %s819_s13, 9 }
  0x48   : > { %306 = vmatprep.mubr.f32.mxu0 %v781_v0  ;;  %377 = vmatprep.mubr.f32.mxu1 %v781_v0  ;;  %v238_v3 = vld [vmem:[%s926_s26 + $0x1e0] sm:$0xff]  ;;  %v240_v4 = vld [vmem:[%s926_s26 + $0x1f0] sm:$0xff]  ;;  %v235_v5 = vld [vmem:[%s926_s26 + $0x1c8] sm:$0xff]  ;;  %s174_s28 = scalar_lea.vmem [#allocation7], %s567_s20  ;;  %s1001_s29 = scalar_lea.hbm %s1040_s2, %s574_s23 }
  0x49   : > { %242 = vmatprep.subr.mxu0 %v239_v1  ;;  %313 = vmatprep.subr.mxu1 %v241_v2  ;;  %v237_v6 = vld [vmem:[%s926_s26 + $0x1d8] sm:$0xff]  ;;  %v234_v7 = vld [vmem:[%s926_s26 + $0x1c0] sm:$0xff]  ;;  %v236_v8 = vld [vmem:[%s926_s26 + $0x1d0] sm:$0xff]  ;;  %s475_s7 = sshll.u32 %s174_s28, 4  ;;  %s461_s30 = scalar_lea.sflag [#allocation4], %s922_s19  ;;  %s476_s7 = int_to_ptr.vmem [resolvable:$true] %s475_s7 }
  0x4a   : > { %243 = vmatpush1.msra.mxu0 %v238_v3  ;;  %314 = vmatpush1.msra.mxu1 %v240_v4  ;;  %v231_v9 = vld [vmem:[%s926_s26 + $0x1a8] sm:$0xff]  ;;  %v233_v10 = vld [vmem:[%s926_s26 + $0x1b8] sm:$0xff]  ;;  %v230_v11 = vld [vmem:[%s926_s26 + $0x1a0] sm:$0xff]  ;;  %s706_s27 = scalar_lea.vmem %s476_s7, 512  ;;  %p1057_p3 = scmp.ne.s32.totalorder %s1047_s21, 0 }
  0x4b   : > { %244 = vmatprep.subr.mxu0 %v235_v5  ;;  %315 = vmatprep.subr.mxu1 %v237_v6  ;;  %v232_v12 = vld [vmem:[%s926_s26 + $0x1b0] sm:$0xff]  ;;  %v227_v13 = vld [vmem:[%s926_s26 + $0x188] sm:$0xff]  ;;  %v229_v14 = vld [vmem:[%s926_s26 + $0x198] sm:$0xff]  ;;  %p707_p13 = scmp.ne.s32.totalorder %s476_s7, %s706_s27  ;;  %s782_s13 = smov [#allocation7]  }
  0x4c   : > { %245 = vmatpush1.msra.mxu0 %v234_v7  ;;  %316 = vmatpush1.msra.mxu1 %v236_v8  ;;  %v226_v15 = vld [vmem:[%s926_s26 + $0x180] sm:$0xff]  ;;  %v228_v16 = vld [vmem:[%s926_s26 + $0x190] sm:$0xff]  ;;  %v223_v17 = vld [vmem:[%s926_s26 + $0x168] sm:$0xff]  ;;  %s710_s3 = sshll.u32 %s782_s13, 4  ;;  %s711_s3 = int_to_ptr.vmem [resolvable:$false] %s710_s3 }
  0x4d   : > { %246 = vmatprep.subr.mxu0 %v231_v9  ;;  %317 = vmatprep.subr.mxu1 %v233_v10  ;;  %v225_v18 = vld [vmem:[%s926_s26 + $0x178] sm:$0xff]  ;;  %v222_v19 = vld [vmem:[%s926_s26 + $0x160] sm:$0xff]  ;;  %v224_v20 = vld [vmem:[%s926_s26 + $0x170] sm:$0xff]  ;;  %p708_p7 = pnand %p707_p13, %p1057_p3  ;;  %s712_s4 = scalar_lea.vmem %s711_s3, 1024 }
  0x4e   : > { %247 = vmatpush1.msra.mxu0 %v230_v11  ;;  %318 = vmatpush1.msra.mxu1 %v232_v12  ;;  %v219_v21 = vld [vmem:[%s926_s26 + $0x148] sm:$0xff]  ;;  %v221_v22 = vld [vmem:[%s926_s26 + $0x158] sm:$0xff]  ;;  %v218_v23 = vld [vmem:[%s926_s26 + $0x140] sm:$0xff]  ;;  %p713_p9 = scmp.lt.s32.totalorder %s476_s7, %s711_s3  ;;  %p714_p10 = scmp.lt.s32.totalorder %s712_s4, %s706_s27 }
  0x4f   : > { %248 = vmatprep.subr.mxu0 %v227_v13  ;;  %319 = vmatprep.subr.mxu1 %v229_v14  ;;  %v220_v24 = vld [vmem:[%s926_s26 + $0x150] sm:$0xff]  ;;  %v215_v25 = vld [vmem:[%s926_s26 + $0x128] sm:$0xff]  ;;  %v217_v26 = vld [vmem:[%s926_s26 + $0x138] sm:$0xff]  ;;  %p709_p8 = pneg %p708_p7 }
  0x50   : > { %249 = vmatpush1.msra.mxu0 %v226_v15  ;;  %320 = vmatpush1.msra.mxu1 %v228_v16  ;;  %v214_v27 = vld [vmem:[%s926_s26 + $0x120] sm:$0xff]  ;;  %v216_v28 = vld [vmem:[%s926_s26 + $0x130] sm:$0xff]  ;;  %v211_v29 = vld [vmem:[%s926_s26 + $0x108] sm:$0xff]  ;;  %p715_p2 = por %p714_p10, %p713_p9 }
  0x51   : > { %250 = vmatprep.subr.mxu0 %v223_v17  ;;  %321 = vmatprep.subr.mxu1 %v225_v18  ;;  %v213_v30 = vld [vmem:[%s926_s26 + $0x118] sm:$0xff]  ;;  %v210_v31 = vld [vmem:[%s926_s26 + $0x100] sm:$0xff]  ;;  %v212_v32 = vld [vmem:[%s926_s26 + $0x110] sm:$0xff] }
  0x52   : > { %251 = vmatpush1.msra.mxu0 %v222_v19  ;;  %322 = vmatpush1.msra.mxu1 %v224_v20  ;;  %v207_v33 = vld [vmem:[%s926_s26 + $0xe8] sm:$0xff]  ;;  %v209_v34 = vld [vmem:[%s926_s26 + $0xf8] sm:$0xff]  ;;  %v206_v35 = vld [vmem:[%s926_s26 + $0xe0] sm:$0xff]  ;;  %p716_p0 = pnand %p715_p2, %p709_p8 }
  0x53   : > { %252 = vmatprep.subr.mxu0 %v219_v21  ;;  %323 = vmatprep.subr.mxu1 %v221_v22  ;;  %v208_v36 = vld [vmem:[%s926_s26 + $0xf0] sm:$0xff]  ;;  %v203_v37 = vld [vmem:[%s926_s26 + $0xc8] sm:$0xff]  ;;  %v205_v38 = vld [vmem:[%s926_s26 + $0xd8] sm:$0xff] }
  0x54   : > { %253 = vmatpush1.msra.mxu0 %v218_v23  ;;  %324 = vmatpush1.msra.mxu1 %v220_v24  ;;  %v202_v39 = vld [vmem:[%s926_s26 + $0xc0] sm:$0xff]  ;;  %v204_v40 = vld [vmem:[%s926_s26 + $0xd0] sm:$0xff]  ;;  %v199_v41 = vld [vmem:[%s926_s26 + $0xa8] sm:$0xff] }
  0x55   : > { %254 = vmatprep.subr.mxu0 %v215_v25  ;;  %325 = vmatprep.subr.mxu1 %v217_v26  ;;  %v201_v42 = vld [vmem:[%s926_s26 + $0xb8] sm:$0xff]  ;;  %v198_v43 = vld [vmem:[%s926_s26 + $0xa0] sm:$0xff]  ;;  %v200_v44 = vld [vmem:[%s926_s26 + $0xb0] sm:$0xff] }
  0x56   : > { %255 = vmatpush1.msra.mxu0 %v214_v27  ;;  %326 = vmatpush1.msra.mxu1 %v216_v28  ;;  %v195_v45 = vld [vmem:[%s926_s26 + $0x88] sm:$0xff]  ;;  %v197_v46 = vld [vmem:[%s926_s26 + $0x98] sm:$0xff]  ;;  %v194_v47 = vld [vmem:[%s926_s26 + $0x80] sm:$0xff] }
  0x57   : > { %256 = vmatprep.subr.mxu0 %v211_v29  ;;  %327 = vmatprep.subr.mxu1 %v213_v30  ;;  %v196_v48 = vld [vmem:[%s926_s26 + $0x90] sm:$0xff]  ;;  %v191_v49 = vld [vmem:[%s926_s26 + $0x68] sm:$0xff]  ;;  %v193_v50 = vld [vmem:[%s926_s26 + $0x78] sm:$0xff] }
  0x58   : > { %257 = vmatpush1.msra.mxu0 %v210_v31  ;;  %328 = vmatpush1.msra.mxu1 %v212_v32  ;;  %v190_v51 = vld [vmem:[%s926_s26 + $0x60] sm:$0xff]  ;;  %v192_v52 = vld [vmem:[%s926_s26 + $0x70] sm:$0xff]  ;;  %v187_v53 = vld [vmem:[%s926_s26 + $0x48] sm:$0xff] }
  0x59   : > { %258 = vmatprep.subr.mxu0 %v207_v33  ;;  %329 = vmatprep.subr.mxu1 %v209_v34  ;;  %v189_v54 = vld [vmem:[%s926_s26 + $0x58] sm:$0xff]  ;;  %v186_v55 = vld [vmem:[%s926_s26 + $0x40] sm:$0xff]  ;;  %v188_v56 = vld [vmem:[%s926_s26 + $0x50] sm:$0xff] }
  0x5a   : > { %259 = vmatpush1.msra.mxu0 %v206_v35  ;;  %330 = vmatpush1.msra.mxu1 %v208_v36  ;;  %v183_v57 = vld [vmem:[%s926_s26 + $0x28] sm:$0xff]  ;;  %v185_v58 = vld [vmem:[%s926_s26 + $0x38] sm:$0xff]  ;;  %v182_v59 = vld [vmem:[%s926_s26 + $0x20] sm:$0xff] }
  0x5b   : > { %260 = vmatprep.subr.mxu0 %v203_v37  ;;  %331 = vmatprep.subr.mxu1 %v205_v38  ;;  %v184_v60 = vld [vmem:[%s926_s26 + $0x30] sm:$0xff]  ;;  %v179_v61 = vld [vmem:[%s926_s26 + $0x8] sm:$0xff]  ;;  %v181_v62 = vld [vmem:[%s926_s26 + $0x18] sm:$0xff] }
  0x5c   : > { %261 = vmatpush1.msra.mxu0 %v202_v39  ;;  %332 = vmatpush1.msra.mxu1 %v204_v40  ;;  %v178_v63 = vld [vmem:[%s926_s26] sm:$0xff]  ;;  %v180_v0 = vld [vmem:[%s926_s26 + $0x10] sm:$0xff]  ;;  %v177_v1 = vld [vmem:[#allocation2] sm:$0xff] }
  0x5d   : > { %262 = vmatprep.subr.mxu0 %v199_v41  ;;  %333 = vmatprep.subr.mxu1 %v201_v42 }
  0x5e   : > { %263 = vmatpush1.msra.mxu0 %v198_v43  ;;  %334 = vmatpush1.msra.mxu1 %v200_v44 }
  0x5f   : > { %264 = vmatprep.subr.mxu0 %v195_v45  ;;  %335 = vmatprep.subr.mxu1 %v197_v46 }
  0x60   : > { %265 = vmatpush1.msra.mxu0 %v194_v47  ;;  %336 = vmatpush1.msra.mxu1 %v196_v48 }
  0x61   : > { %266 = vmatprep.subr.mxu0 %v191_v49  ;;  %337 = vmatprep.subr.mxu1 %v193_v50 }
  0x62   : > { %267 = vmatpush1.msra.mxu0 %v190_v51  ;;  %338 = vmatpush1.msra.mxu1 %v192_v52 }
  0x63   : > { %268 = vmatprep.subr.mxu0 %v187_v53  ;;  %339 = vmatprep.subr.mxu1 %v189_v54 }
  0x64   : > { %269 = vmatpush1.msra.mxu0 %v186_v55  ;;  %340 = vmatpush1.msra.mxu1 %v188_v56 }
  0x65   : > { %270 = vmatprep.subr.mxu0 %v183_v57  ;;  %341 = vmatprep.subr.mxu1 %v185_v58 }
  0x66   : > { %271 = vmatpush1.msra.mxu0 %v182_v59  ;;  %342 = vmatpush1.msra.mxu1 %v184_v60 }
  0x67   : > { %272 = vmatprep.subr.mxu0 %v179_v61  ;;  %343 = vmatprep.subr.mxu1 %v181_v62 }
  0x68   : > { %273 = vmatpush1.msra.mxu0 %v178_v63  ;;  %344 = vmatpush1.msra.mxu1 %v180_v0 }
  0x69   : > { %307 = vmatmul.mubr.f32.vlgmr.msra.gmra.mxu0 %v177_v1  ;;  %378 = vmatmul.mubr.f32.vlgmr.msra.gmra.mxu1 %v177_v1 }
 0x129   : > { %v308_v2 = vpop.f32.mrf.mxu0  ;;  %v379_v3 = vpop.f32.mrf.mxu1 }
 0x12a   : > { %v384_v4 = vrot.slane %v308_v2, 4  ;;  %v396_v5 = vrot.slane %v379_v3, 4 }
 0x12b   : > { %v310_v6 = vpop.f32.mrf.mxu0  ;;  %v381_v7 = vpop.f32.mrf.mxu1 }
 0x12c   : > { %v385_v8 = vmax.f32 %v308_v2, %v384_v4  ;;  %v397_v9 = vmax.f32 %v379_v3, %v396_v5  ;;  %v390_v10 = vrot.slane %v310_v6, 4  ;;  %v402_v11 = vrot.slane %v381_v7, 4 }
 0x12e   : > { %v386_v12 = vrot.slane %v385_v8, 2  ;;  %v398_v13 = vrot.slane %v397_v9, 2  ;;  %v391_v14 = vmax.f32 %v310_v6, %v390_v10  ;;  %v403_v15 = vmax.f32 %v381_v7, %v402_v11 }
 0x130   : > { %v387_v16 = vmax.f32 %v385_v8, %v386_v12  ;;  %v399_v17 = vmax.f32 %v397_v9, %v398_v13  ;;  %v392_v18 = vrot.slane %v391_v14, 2  ;;  %v404_v19 = vrot.slane %v403_v15, 2 }
 0x132   : > { %v388_v20 = vrot.slane %v387_v16, 1  ;;  %v400_v21 = vrot.slane %v399_v17, 1  ;;  %v393_v22 = vmax.f32 %v391_v14, %v392_v18  ;;  %v405_v23 = vmax.f32 %v403_v15, %v404_v19 }
 0x134   : > { %v389_v24 = vmax.f32 %v387_v16, %v388_v20  ;;  %v401_v25 = vmax.f32 %v399_v17, %v400_v21  ;;  %v394_v26 = vrot.slane %v393_v22, 1  ;;  %v406_v27 = vrot.slane %v405_v23, 1 }
 0x136   : > { %v408_v28 = vsub.f32 %v308_v2, %v389_v24  ;;  %v410_v29 = vsub.f32 %v379_v3, %v401_v25  ;;  %v395_v30 = vmax.f32 %v393_v22, %v394_v26  ;;  %v407_v31 = vmax.f32 %v405_v23, %v406_v27 }
 0x138   : > { %v412_v32 = vmul.f32 1.442695, %v408_v28  ;;  %v416_v33 = vmul.f32 1.442695, %v410_v29  ;;  %v409_v34 = vsub.f32 %v310_v6, %v395_v30  ;;  %v411_v35 = vsub.f32 %v381_v7, %v407_v31 }
 0x13a   : > { %636 = vpow2.f32 %v412_v32  ;;  %v414_v36 = vmul.f32 1.442695, %v409_v34  ;;  %v418_v37 = vmul.f32 1.442695, %v411_v35 }
 0x13b   : > { %638 = vpow2.f32 %v416_v33 }
 0x13c   : > { %640 = vpow2.f32 %v414_v36 }
 0x13d   : > { %642 = vpow2.f32 %v418_v37 }
 0x147   : > { %v637_v38 = vpop.eup %636 }
 0x148   : > { %v639_v39 = vpop.eup %638  ;;  %v420_v40 = vrot.slane %v637_v38, 4 }
 0x149   : > { %v641_v41 = vpop.eup %640  ;;  %v432_v42 = vrot.slane %v639_v39, 4 }
 0x14a   : > { %v643_v43 = vpop.eup %642  ;;  %v421_v44 = vadd.f32 %v637_v38, %v420_v40  ;;  %v426_v45 = vrot.slane %v641_v41, 4 }
 0x14b   : > { %v433_v46 = vadd.f32 %v639_v39, %v432_v42  ;;  %v438_v47 = vrot.slane %v643_v43, 4 }
 0x14c   : > { %v422_v48 = vrot.slane %v421_v44, 2  ;;  %v427_v49 = vadd.f32 %v641_v41, %v426_v45 }
 0x14d   : > { %v434_v50 = vrot.slane %v433_v46, 2  ;;  %v439_v51 = vadd.f32 %v643_v43, %v438_v47 }
 0x14e   : > { %v423_v52 = vadd.f32 %v422_v48, %v421_v44  ;;  %v428_v53 = vrot.slane %v427_v49, 2 }
 0x14f   : > { %v435_v54 = vadd.f32 %v434_v50, %v433_v46  ;;  %v440_v55 = vrot.slane %v439_v51, 2 }
 0x150   : > { %v424_v56 = vrot.slane %v423_v52, 1  ;;  %v429_v57 = vadd.f32 %v428_v53, %v427_v49 }
 0x151   : > { %v436_v58 = vrot.slane %v435_v54, 1  ;;  %v441_v59 = vadd.f32 %v440_v55, %v439_v51 }
 0x152   : > { %v425_v60 = vadd.f32 %v424_v56, %v423_v52  ;;  %v430_v61 = vrot.slane %v429_v57, 1 }
 0x153   : > { %v437_v62 = vadd.f32 %v436_v58, %v435_v54  ;;  %v442_v63 = vrot.slane %v441_v59, 1 }
 0x154   : > { %644 = vlog2.f32 %v425_v60  ;;  %v431_v0 = vadd.f32 %v430_v61, %v429_v57 }
 0x155   : > { %646 = vlog2.f32 %v437_v62  ;;  %v443_v1 = vadd.f32 %v442_v63, %v441_v59 }
 0x156   : > { %648 = vlog2.f32 %v431_v0 }
 0x157   : > { %650 = vlog2.f32 %v443_v1 }
 0x161   : > { %v645_v2 = vpop.eup %644 }
 0x162   : > { %v647_v3 = vpop.eup %646  ;;  %v445_v4 = vmul.f32 0.6931472, %v645_v2 }
 0x163   : > { %v649_v5 = vpop.eup %648  ;;  %v449_v6 = vmul.f32 0.6931472, %v647_v3 }
 0x164   : > { %v651_v7 = vpop.eup %650  ;;  %v452_v8 = vsub.f32 %v408_v28, %v445_v4  ;;  %v447_v9 = vmul.f32 0.6931472, %v649_v5 }
 0x165   : > { %v454_v10 = vsub.f32 %v410_v29, %v449_v6  ;;  %v451_v11 = vmul.f32 0.6931472, %v651_v7 }
 0x166   : > { %456 = vst [vmem:[%s174_s28] sm:$0xff] %v452_v8  ;;  %v453_v12 = vsub.f32 %v409_v34, %v447_v9 }
 0x167   : > { %458 = vst [vmem:[%s174_s28 + $0x10] sm:$0xff] %v454_v10  ;;  %v455_v13 = vsub.f32 %v411_v35, %v451_v11 }
 0x168   : > { %457 = vst [vmem:[%s174_s28 + $0x8] sm:$0xff] %v453_v12 }
 0x169   : > { %459 = vst [vmem:[%s174_s28 + $0x18] sm:$0xff] %v455_v13 }
 0x16a   : > { %719 = shalt.err (!%p716_p0)
}
 0x16b   : > { %s720_s5 = scalar_lea.hbm %s1001_s29, 512  ;;  %s724_s14 = scalar_lea.hbm %s1040_s2, 1024 }
 0x16c   : > { %p721_p4 = scmp.ne.s32.totalorder %s1001_s29, %s720_s5  ;;  %p725_p12 = scmp.lt.s32.totalorder %s1001_s29, %s1040_s2 }
 0x16d   : > { %p726_p1 = scmp.lt.s32.totalorder %s724_s14, %s720_s5 }
 0x16e   : > { %p722_p11 = pnand %p721_p4, %p1057_p3 }
 0x16f   : > { %p727_p6 = por %p726_p1, %p725_p12 }
 0x170   : > { %p723_p5 = pneg %p722_p11 }
 0x172   : > { %p728_p13 = pnand %p727_p6, %p723_p5 }
 0x174   : > { %731 = shalt.err (!%p728_p13)
}
 0x175   : > { %581 = dma.vmem_to_hbm [thread:$0]  (%p1057_p3), %s476_s7, 512, %s1001_s29, %s461_s30  }
 0x176 PF: > { %s487_s25 = sand.u32 1, %s762_s9   ;;  %p1058_p7 = scmp.ne.s32.totalorder %s1048_s22, 0 }
 0x177   : > { %p1059_p8 = scmp.ge.s32.totalorder %s774_s12, 2  ;;  %s488_s26 = scalar_lea.sflag [#allocation4], %s487_s25 }
 0x179   : > { %p592_p9 = pnand %p1059_p8, %p1058_p7 }
 0x17b   : > { %p593_p10 = pneg %p592_p9 }
 0x17d   : > { %757 = dma.done.wait (%p593_p10), %s488_s26, 512  }
 0x17e   : > { %759 = vsyncadd (%p593_p10), %s488_s26, 4294966784  ;;  %p16_p2 = scmp.ge.s32.totalorder %s823_s15, 4   ;;  %s1060_s9 = smov %s766_s10 }
 0x17f   : > { %s1061_s10 = smov %s770_s11  ;;  %s1062_s11 = smov %s835_s18 }
 0x180   : > { %s1063_s12 = smov %s823_s15  ;;  %18 = sbr.rel (!%p16_p2) target bundleno = 6 (0x6), region = 78 }
 0x185   :  { %493 = vsyncpa [#allocation3], 1 }
 0x186   :  { %495 = vsyncpa [#allocation3 + $0x1], 1 }
 0x187   :  { %496 = vsyncpa [#allocation6], 1 }
 0x188   :  { %498 = vsyncpa [#allocation6 + $0x1], 1 }
 0x189   :  { %499 = vsyncpa [#allocation4], 1 }
 0x18a   :  { %501 = vsyncpa [#allocation4 + $0x1], 1 }

</bundles_post_ra>
